<compile_context>
chip_gen: v7x
topology: tpu7x:2x2x1
jax: 0.10.0
libtpu: 0.0.40
codegen_flags: <defaults>
</compile_context>

<pallas_src>
import jax
import jax.numpy as jnp
from jax import lax
from jax.experimental import pallas as pl
from jax.experimental.pallas import tpu as pltpu


def mlp_kernel(x_ref, w1t_ref, b1t_ref, w2t_ref, b2t_ref, w3t_ref, b3_ref, o_ref):
    # x_ref/o_ref: (1, TB) batch-in-lanes tiles (f32).
    # w1t: (32,1) f32   b1t: (32,1) f32
    # w2t: (64,32) cdt  b2t: (64,1) f32
    # w3t: (1,64)  cdt  b3 : (1,1)  f32
    cdt = w2t_ref.dtype                    # compute dtype for tanh / MXU inputs
    tb = x_ref.shape[1]
    # Largest chunk from {512, 256, 128} dividing tb (wrapper guarantees tb % 128 == 0).
    chunk = next(c for c in (512, 256, 128) if tb % c == 0)
    n_chunks = tb // chunk

    # Hoist weight/bias lane-broadcasts out of the chunk loop (JAX does not CSE
    # broadcast_in_dim; an unrolled loop would otherwise re-emit them per chunk).
    w1b = jnp.broadcast_to(w1t_ref[...], (32, chunk))   # f32
    b1b = jnp.broadcast_to(b1t_ref[...], (32, chunk))   # f32
    b2b = jnp.broadcast_to(b2t_ref[...], (64, chunk))   # f32
    b3b = jnp.broadcast_to(b3_ref[...], (1, chunk))     # f32
    w2t = w2t_ref[...]                                   # (64, 32) cdt
    w3t = w3t_ref[...]                                   # (1, 64)  cdt

    def body(c, carry):
        start = pl.multiple_of(c * chunk, chunk)
        x = x_ref[:, pl.ds(start, chunk)]                                  # (1, C) f32
        # fc1 on the VPU (outer product via broadcast mul-add); tanh on the EUP.
        h1 = lax.tanh((w1b * x + b1b).astype(cdt))                         # (32, C)
        # fc2 on the MXU with f32 accumulation; tanh on the EUP.
        pre2 = jnp.dot(w2t, h1, preferred_element_type=jnp.float32) + b2b  # (64, C) f32
        h2 = lax.tanh(pre2.astype(cdt))                                    # (64, C)
        # fc3: (1,64) @ (64,C) -> (1,C); the MXU has plenty of slack here.
        y = jnp.dot(w3t, h2, preferred_element_type=jnp.float32) + b3b     # (1, C) f32
        o_ref[:, pl.ds(start, chunk)] = y.astype(o_ref.dtype)              # lane-dense store
        return carry

    # Bounded unroll: enough for LLO overlap without blowing vreg pressure / code size.
    lax.fori_loop(0, n_chunks, body, 0, unroll=min(4, n_chunks))


def _default_compute_dtype():
    """bf16 tanh / MXU inputs on v6e & v7x (native bf16 EUP/VPU); f32 on v5e & unknown."""
    try:
        kind = jax.devices()[0].device_kind.lower()
    except Exception:
        return jnp.float32
    if ("v6" in kind) or ("v7" in kind) or ("tpu7" in kind):
        return jnp.bfloat16
    return jnp.float32


def mlp_forward(x, w1, b1, w2, b2, w3, b3, *, tb=32768, compute_dtype=None):
    """x: (N, 1) float32. Weights stored (in, out): y = x @ W + b semantics.
    Returns (N, 1) float32."""
    if compute_dtype is None:
        compute_dtype = _default_compute_dtype()

    N = x.shape[0]
    x_row = x.reshape(1, N)                    # batch-in-lanes: (N,1) -> (1,N)

    # Pick the batch tile:
    #  - at least 2 grid steps whenever there is enough work (v7x megacore sharding),
    #  - lane-aligned (multiple of 128), preferably a multiple of 512/256 so the
    #    in-kernel chunk stays large,
    #  - capped near the requested tb (a (1, tb) f32 block is tiny in VMEM even at 32K).
    n128 = pl.cdiv(N, 128) * 128
    g = pl.cdiv(n128, tb)
    if n128 >= 256:
        g = max(g, 2)
    tb = pl.cdiv(pl.cdiv(n128, g), 128) * 128
    if tb >= 512:
        tb = pl.cdiv(tb, 512) * 512
    elif tb >= 256:
        tb = pl.cdiv(tb, 256) * 256
    n_pad = g * tb
    if n_pad != N:
        x_row = jnp.pad(x_row, ((0, 0), (0, n_pad - N)))

    # Transpose weights once so layers are computed as y = W^T @ h.
    w1t = w1.T.astype(jnp.float32)             # (32, 1)  fc1 stays on the f32 VPU
    b1t = b1.reshape(32, 1).astype(jnp.float32)
    w2t = w2.T.astype(compute_dtype)           # (64, 32) MXU lhs
    b2t = b2.reshape(64, 1).astype(jnp.float32)
    w3t = w3.T.astype(compute_dtype)           # (1, 64)  MXU lhs
    b3r = b3.reshape(1, 1).astype(jnp.float32)

    # Weights/biases are tiny and use a constant (0,0) index_map, so they stay
    # resident in VMEM across grid steps.
    full = lambda a: pl.BlockSpec(a.shape, lambda i: (0, 0))

    cost = pl.CostEstimate(
        flops=4288 * n_pad,             # 2*(32 + 32*64 + 64) per batch element
        transcendentals=96 * n_pad,     # 32 + 64 tanh per batch element
        bytes_accessed=8 * n_pad + 4 * (32 + 32 + 64 * 32 + 64 + 64 + 1),
    )

    y_row = pl.pallas_call(
        mlp_kernel,
        out_shape=jax.ShapeDtypeStruct((1, n_pad), jnp.float32),
        grid=(g,),
        in_specs=[
            pl.BlockSpec((1, tb), lambda i: (0, i)),   # x tile (lane-dense)
            full(w1t), full(b1t),
            full(w2t), full(b2t),
            full(w3t), full(b3r),
        ],
        out_specs=pl.BlockSpec((1, tb), lambda i: (0, i)),
        compiler_params=pltpu.CompilerParams(
            dimension_semantics=("parallel",)),        # megacore-shardable on v7x
        cost_estimate=cost,
    )(x_row, w1t, b1t, w2t, b2t, w3t, b3r)

    return y_row[:, :N].reshape(N, 1)


def init_params(key):
    """PyTorch nn.Linear-style uniform(-1/sqrt(fan_in), +1/sqrt(fan_in)) init."""
    ks = jax.random.split(key, 6)

    def linear(kw, kb, fan_in, fan_out):
        bound = 1.0 / jnp.sqrt(jnp.asarray(fan_in, jnp.float32))
        w = jax.random.uniform(kw, (fan_in, fan_out), jnp.float32, -bound, bound)
        b = jax.random.uniform(kb, (1, fan_out), jnp.float32, -bound, bound)
        return w, b

    w1, b1 = linear(ks[0], ks[1], 1, 32)
    w2, b2 = linear(ks[2], ks[3], 32, 64)
    w3, b3 = linear(ks[4], ks[5], 64, 1)
    return w1, b1, w2, b2, w3, b3


if __name__ == "__main__":
    key = jax.random.PRNGKey(0)
    k_x, k_p = jax.random.split(key)

    # Input matching the module's usage: scalars in [-5.12, 5.12], shape (N, 1).
    # N = 1000 (same size as the module's np.linspace grid); exercises the
    # ragged/padded last tile and a 2-step grid (so both v7x TCs get work).
    N = 1000
    x = jax.random.uniform(k_x, (N, 1), jnp.float32, -5.12, 5.12)

    w1, b1, w2, b2, w3, b3 = init_params(k_p)

    out = mlp_forward(x, w1, b1, w2, b2, w3, b3)
    out = jax.block_until_ready(out)

    # Pure-JAX reference check of the same math (f32).
    ref = jnp.tanh(x @ w1 + b1)
    ref = jnp.tanh(ref @ w2 + b2)
    ref = ref @ w3 + b3

    bf16_path = _default_compute_dtype() == jnp.bfloat16
    atol = 5e-2 if bf16_path else 1e-5
    rtol = 5e-2 if bf16_path else 1e-5
    assert out.shape == (N, 1)
    assert jnp.allclose(out, ref, atol=atol, rtol=rtol), float(jnp.max(jnp.abs(out - ref)))

    print("KERNEL_OK")
</pallas_src>

<mosaic_0001>
module attributes {stable_mosaic.version = 11 : i64} {
  func.func @mlp_kernel(%arg0: i32, %arg1: memref<1x512xf32, #tpu.memory_space<vmem>>, %arg2: memref<32x1xf32, #tpu.memory_space<vmem>>, %arg3: memref<32x1xf32, #tpu.memory_space<vmem>>, %arg4: memref<64x32xf32, #tpu.memory_space<vmem>>, %arg5: memref<64x1xf32, #tpu.memory_space<vmem>>, %arg6: memref<1x64xf32, #tpu.memory_space<vmem>>, %arg7: memref<1x1xf32, #tpu.memory_space<vmem>>, %arg8: memref<1x512xf32, #tpu.memory_space<vmem>>) attributes {dimension_semantics = [#tpu.dimension_semantics<parallel>], iteration_bounds = array<i64: 2>, scalar_prefetch = 0 : i64, scratch_operands = 0 : i64, tpu.core_type = #tpu.core_type<tc>, window_params = [{transform_indices = @transform_0, window_bounds = array<i64: 1, 512>}, {pipeline_mode = #tpu.pipeline_mode<synchronous>, transform_indices = @transform_1, window_bounds = array<i64: 32, 1>}, {pipeline_mode = #tpu.pipeline_mode<synchronous>, transform_indices = @transform_2, window_bounds = array<i64: 32, 1>}, {pipeline_mode = #tpu.pipeline_mode<synchronous>, transform_indices = @transform_3, window_bounds = array<i64: 64, 32>}, {pipeline_mode = #tpu.pipeline_mode<synchronous>, transform_indices = @transform_4, window_bounds = array<i64: 64, 1>}, {pipeline_mode = #tpu.pipeline_mode<synchronous>, transform_indices = @transform_5, window_bounds = array<i64: 1, 64>}, {pipeline_mode = #tpu.pipeline_mode<synchronous>, transform_indices = @transform_6, window_bounds = array<i64: 1, 1>}, {transform_indices = @transform_7, window_bounds = array<i64: 1, 512>}]} {
    %c0 = arith.constant 0 : index
    %c0_0 = arith.constant 0 : index
    %0 = vector.load %arg2[%c0, %c0_0] : memref<32x1xf32, #tpu.memory_space<vmem>>, vector<32x1xf32>
    %1 = vector.shape_cast %0 : vector<32x1xf32> to vector<32x1xf32>
    %2 = vector.broadcast %1 : vector<32x1xf32> to vector<32x512xf32>
    %c0_1 = arith.constant 0 : index
    %c0_2 = arith.constant 0 : index
    %3 = vector.load %arg3[%c0_1, %c0_2] : memref<32x1xf32, #tpu.memory_space<vmem>>, vector<32x1xf32>
    %4 = vector.shape_cast %3 : vector<32x1xf32> to vector<32x1xf32>
    %5 = vector.broadcast %4 : vector<32x1xf32> to vector<32x512xf32>
    %c0_3 = arith.constant 0 : index
    %c0_4 = arith.constant 0 : index
    %6 = vector.load %arg5[%c0_3, %c0_4] : memref<64x1xf32, #tpu.memory_space<vmem>>, vector<64x1xf32>
    %7 = vector.shape_cast %6 : vector<64x1xf32> to vector<64x1xf32>
    %8 = vector.broadcast %7 : vector<64x1xf32> to vector<64x512xf32>
    %c0_5 = arith.constant 0 : index
    %c0_6 = arith.constant 0 : index
    %9 = vector.load %arg7[%c0_5, %c0_6] : memref<1x1xf32, #tpu.memory_space<vmem>>, vector<1x1xf32>
    %10 = vector.shape_cast %9 : vector<1x1xf32> to vector<1x1xf32>
    %11 = vector.broadcast %10 : vector<1x1xf32> to vector<1x512xf32>
    %c0_7 = arith.constant 0 : index
    %c0_8 = arith.constant 0 : index
    %12 = vector.load %arg4[%c0_7, %c0_8] : memref<64x32xf32, #tpu.memory_space<vmem>>, vector<64x32xf32>
    %c0_9 = arith.constant 0 : index
    %c0_10 = arith.constant 0 : index
    %13 = vector.load %arg6[%c0_9, %c0_10] : memref<1x64xf32, #tpu.memory_space<vmem>>, vector<1x64xf32>
    %c0_i32 = arith.constant 0 : i32
    %c512_i32 = arith.constant 512 : i32
    %14 = arith.muli %c0_i32, %c512_i32 : i32
    %15 = tpu.assume_multiple %14, 512 : i32
    %c0_11 = arith.constant 0 : index
    %16 = arith.index_cast %15 : i32 to index
    %17 = vector.load %arg1[%c0_11, %16] : memref<1x512xf32, #tpu.memory_space<vmem>>, vector<1x512xf32>
    %18 = vector.broadcast %17 : vector<1x512xf32> to vector<32x512xf32>
    %19 = arith.mulf %2, %18 : vector<32x512xf32>
    %20 = arith.addf %19, %5 : vector<32x512xf32>
    %21 = math.tanh %20 : vector<32x512xf32>
    %cst = arith.constant dense<0.000000e+00> : vector<64x512xf32>
    %22 = tpu.matmul %12, %21, %cst {dimension_numbers = #tpu.dot_dimension_numbers<[1], [0], [0], [1], [0, 0, 1, 1], [], []>} : vector<64x32xf32>, vector<32x512xf32>, vector<64x512xf32> -> vector<64x512xf32>
    %23 = arith.addf %22, %8 : vector<64x512xf32>
    %24 = math.tanh %23 : vector<64x512xf32>
    %cst_12 = arith.constant dense<0.000000e+00> : vector<1x512xf32>
    %25 = tpu.matmul %13, %24, %cst_12 {dimension_numbers = #tpu.dot_dimension_numbers<[1], [0], [0], [1], [0, 0, 1, 1], [], []>} : vector<1x64xf32>, vector<64x512xf32>, vector<1x512xf32> -> vector<1x512xf32>
    %26 = arith.addf %25, %11 : vector<1x512xf32>
    %c0_13 = arith.constant 0 : index
    %27 = arith.index_cast %15 : i32 to index
    %28 = vector.load %arg8[%c0_13, %27] : memref<1x512xf32, #tpu.memory_space<vmem>>, vector<1x512xf32>
    tpu.vector_store %arg8[%c0_13, %27], %26 {strides = array<i32>} : memref<1x512xf32, #tpu.memory_space<vmem>>, vector<1x512xf32>,
    %c1_i32 = arith.constant 1 : i32
    return
  }
  func.func @transform_0(%arg0: i32) -> (i32, i32) {
    %c0_i32 = arith.constant 0 : i32
    %c0_i32_0 = arith.constant 0 : i32
    return %c0_i32, %arg0 : i32, i32
  }
  func.func @transform_1(%arg0: i32) -> (i32, i32) {
    %c0_i32 = arith.constant 0 : i32
    %c0_i32_0 = arith.constant 0 : i32
    %c0_i32_1 = arith.constant 0 : i32
    return %c0_i32, %c0_i32_0 : i32, i32
  }
  func.func @transform_2(%arg0: i32) -> (i32, i32) {
    %c0_i32 = arith.constant 0 : i32
    %c0_i32_0 = arith.constant 0 : i32
    %c0_i32_1 = arith.constant 0 : i32
    return %c0_i32, %c0_i32_0 : i32, i32
  }
  func.func @transform_3(%arg0: i32) -> (i32, i32) {
    %c0_i32 = arith.constant 0 : i32
    %c0_i32_0 = arith.constant 0 : i32
    %c0_i32_1 = arith.constant 0 : i32
    return %c0_i32, %c0_i32_0 : i32, i32
  }
  func.func @transform_4(%arg0: i32) -> (i32, i32) {
    %c0_i32 = arith.constant 0 : i32
    %c0_i32_0 = arith.constant 0 : i32
    %c0_i32_1 = arith.constant 0 : i32
    return %c0_i32, %c0_i32_0 : i32, i32
  }
  func.func @transform_5(%arg0: i32) -> (i32, i32) {
    %c0_i32 = arith.constant 0 : i32
    %c0_i32_0 = arith.constant 0 : i32
    %c0_i32_1 = arith.constant 0 : i32
    return %c0_i32, %c0_i32_0 : i32, i32
  }
  func.func @transform_6(%arg0: i32) -> (i32, i32) {
    %c0_i32 = arith.constant 0 : i32
    %c0_i32_0 = arith.constant 0 : i32
    %c0_i32_1 = arith.constant 0 : i32
    return %c0_i32, %c0_i32_0 : i32, i32
  }
  func.func @transform_7(%arg0: i32) -> (i32, i32) {
    %c0_i32 = arith.constant 0 : i32
    %c0_i32_0 = arith.constant 0 : i32
    return %c0_i32, %arg0 : i32, i32
  }
}

</mosaic_0001>

<bundles_post_ra>
// kernel: tpu_custom_call.1
= control target key start
LH: loop header
LB: loop body
LE: loop exit
PB: predicated region body
PF: predicated region fallthrough
CT: control target
= control target key end

     0   :  { %s1548_s0 = inlined_call_operand.vmem [shape: f32[1,1024], index: 0, kind: input, shape index: {}]   ;;  %s1549_s1 = inlined_call_operand.vmem [shape: f32[32,1], index: 1, kind: input, shape index: {}]   ;;  %s1550_s2 = inlined_call_operand.vmem [shape: f32[32,1], index: 2, kind: input, shape index: {}]   ;;  %s1551_s3 = inlined_call_operand.vmem [shape: f32[64,32], index: 3, kind: input, shape index: {}]   ;;  %s1552_s4 = inlined_call_operand.vmem [shape: f32[64,1], index: 4, kind: input, shape index: {}]   ;;  %s1553_s5 = inlined_call_operand.vmem [shape: f32[1,64], index: 5, kind: input, shape index: {}]   ;;  %s1554_s6 = inlined_call_operand.<no memory space> [shape: f32[1,1], index: 6, kind: input, shape index: {}]   ;;  %s1555_s7 = inlined_call_operand.hbm [shape: f32[1,1024], index: 7, kind: output, shape index: {}]  }
   0x1   :  { %v12_v0 = vstv %s1554_s6 }
   0x2   :  { %13 = vst [vmem:[#allocation2] sm:$0x1] %v12_v0 }
   0x3   :  { %14 = vsyncpa [#allocation4], 0 }
   0x4   :  { %16 = vsyncpa [#allocation4 + $0x1], 0  ;;  %s1327_s26 = smov 0   ;;  %s1329_s27 = smov 0  }
   0x5   :  { %s1331_s28 = smov 0   ;;  %s1333_s29 = smov 0  }
   0x6 LB: > { %s1348_s6 = sadd.s32 4294967295, %s1278_s29   ;;  %s998_s30 = sadd.s32 4294967294, %s1278_s29   ;;  %s1278_s29 = sphi %s1333_s29, %s1561_s29   ;;  %s1274_s28 = sphi %s1331_s28, %s1560_s28   ;;  %s1270_s27 = sphi %s1329_s27, %s1559_s27   ;;  %s1266_s26 = sphi %s1327_s26, %s1558_s26  }
   0x7   : > { %s1352_s8 = sadd.s32 1, %s1278_s29   ;;  %s181_s9 = sadd.s32 1, %s1274_s28 }
   0x8   : > { %s178_s10 = ssub.s32 %s1278_s29, %s1352_s8  ;;  %p191_p0 = scmp.ne.s32.totalorder %s1274_s28, %s1270_s27 }
   0x9   : > { %p179_p1 = scmp.eq.s32.totalorder %s178_s10, 0  ;;  %p192_p2 = scmp.eq.s32.totalorder %s1348_s6, 1 }
   0xa   : > { %p197_p3 = scmp.ne.s32.totalorder %s1270_s27, %s1266_s26  ;;  %p198_p4 = scmp.eq.s32.totalorder %s998_s30, 1 }
   0xb   : > { %s1363_s11 = scalar_select %p179_p1, %s1274_s28, %s181_s9  }
   0xc   : > { %p1365_p5 = por %p192_p2, %p191_p0  ;;  %p1369_p6 = por %p198_p4, %p197_p3 }
   0xd   : > { %p1001_p7 = scmp.ge.s32.totalorder %s1278_s29, 1  ;;  %p242_p8 = scmp.lt.s32.totalorder %s1278_s29, 3 }
   0xf   : > { %p243_p9 = pnand %p1001_p7, %p242_p8 }
  0x10   : > { %v303_v1 = vld [vmem:[%s1550_s2] sm:$0xff] (!%p243_p9)  ;;  %v1280_v3 = vmov (!%p243_p9), 0   ;;  %v304_v4 = vld [vmem:[%s1550_s2 + $0x8] sm:$0xff] (!%p243_p9)  ;;  %v282_v6 = vld [vmem:[%s1549_s1 + $0x18] sm:$0xff] (!%p243_p9)  ;;  %v1281_v19 = vmov (!%p243_p9), 0.0   ;;  %s1003_s16 = sshll.u32 (!%p243_p9), %s1348_s6, 2  ;;  %v381_v20 = vlaneseq (!%p243_p9) }
  0x11   : > { %246 = sbr.rel (%p243_p9) target bundleno = 681 (0x2a9), region = 48  ;;  %v279_v2 = vld [vmem:[%s1549_s1] sm:$0xff] (!%p243_p9)  ;;  %1119 = vset.pattern.permute.xlu1 (!%p243_p9), %v1280_v3  ;;  %1118 = vset.pattern.permute.xlu0 (!%p243_p9), %v1280_v3  ;;  %v280_v5 = vld [vmem:[%s1549_s1 + $0x8] sm:$0xff] (!%p243_p9)  ;;  %v281_v7 = vld [vmem:[%s1549_s1 + $0x10] sm:$0xff] (!%p243_p9)  ;;  %p274_p10 = scmp.lt.s32.totalorder (!%p243_p9), %s1003_s16, 7  ;;  %vm464_vm0 = vcmask (!%p243_p9), 261120  }
  0x12   : > { %309 = vperm.xlu1 (!%p243_p9), %1119, %v303_v1   ;;  %285 = vperm.xlu0 (!%p243_p9), %1118, %v279_v2   ;;  %v306_v8 = vld [vmem:[%s1550_s2 + $0x18] sm:$0xff] (!%p243_p9)  ;;  %v305_v9 = vld [vmem:[%s1550_s2 + $0x10] sm:$0xff] (!%p243_p9)  ;;  %v328_v10 = vld [vmem:[%s1552_s4 + $0x8] sm:$0xff] (!%p243_p9)  ;;  %v1427_v21 = vshrl.u32 (!%p243_p9), %v381_v20, 7  ;;  %vm747_vm1 = vcmask (!%p243_p9), 523264   ;;  %s270_s23 = sand.u32 (!%p243_p9), 1, %s1270_s27  }
  0x13   : > { %v327_v11 = vld [vmem:[%s1552_s4] sm:$0xff] (!%p243_p9)  ;;  %v330_v12 = vld [vmem:[%s1552_s4 + $0x18] sm:$0xff] (!%p243_p9)  ;;  %v329_v13 = vld [vmem:[%s1552_s4 + $0x10] sm:$0xff] (!%p243_p9)  ;;  %553 = vmatprep.mubr.f32.mxu0 (!%p243_p9), %v1281_v19  ;;  %666 = vmatprep.mubr.f32.mxu1 (!%p243_p9), %v1281_v19  ;;  %s1002_s24 = sshll.u32 (!%p243_p9), %s270_s23, 2  ;;  %s1027_s25 = sshll.u32 (!%p243_p9), %s1348_s6, 6  ;;  %vm924_vm2 = vcmp.lt.s32.totalorder (!%p243_p9), %v381_v20, 512 }
  0x14   : > { %v332_v14 = vld [vmem:[%s1552_s4 + $0x28] sm:$0xff] (!%p243_p9)  ;;  %v331_v15 = vld [vmem:[%s1552_s4 + $0x20] sm:$0xff] (!%p243_p9)  ;;  %v334_v16 = vld [vmem:[%s1552_s4 + $0x38] sm:$0xff] (!%p243_p9)  ;;  %v383_v22 = vsub.s32 (!%p243_p9), 0, %v1427_v21  ;;  %v402_v23 = vsub.s32 (!%p243_p9), 1, %v1427_v21  ;;  %v406_v24 = vsub.s32 (!%p243_p9), 2, %v1427_v21  ;;  %s1506_s15 = scalar_lea.hbm (!%p243_p9), %s1555_s7, %s1027_s25 }
  0x15   : > { %v333_v17 = vld [vmem:[%s1552_s4 + $0x30] sm:$0xff] (!%p243_p9)  ;;  %v375_v18 = vld [vmem:[#allocation2] sm:$0x1] (!%p243_p9)  ;;  %v410_v25 = vsub.s32 (!%p243_p9), 3, %v1427_v21  ;;  %s272_s30 = scalar_lea.vmem (!%p243_p9), [#allocation3], %s1002_s24  ;;  %s1283_s6 = smov (!%p243_p9), [#allocation3]  }
  0x16   : > { %314 = vperm.xlu1 (!%p243_p9), %1119, %v304_v4   ;;  %290 = vperm.xlu0 (!%p243_p9), %1118, %v280_v5   ;;  %s942_s9 = sshll.u32 (!%p243_p9), %s272_s30, 4  ;;  %s1220_s18 = sshll.u32 (!%p243_p9), %s1283_s6, 4  ;;  %s1508_s9 = int_to_ptr.vmem [resolvable:$true] %s942_s9  ;;  %s1221_s18 = int_to_ptr.vmem [resolvable:$false] %s1220_s18 }
  0x17   : > { %s1216_s17 = scalar_lea.vmem (!%p243_p9), %s1508_s9, 64  ;;  %p1223_p0 = scmp.lt.s32.totalorder (!%p243_p9), %s1508_s9, %s1221_s18 }
  0x18   : > { %s1563_s16 = smov (!%p274_p10, %s1003_s16), 7  ;;  %p1217_p11 = scmp.ne.s32.totalorder %s1508_s9, %s1216_s17 }
  0x19   : > { %s276_s19 = scalar_lea.vmem %s1548_s0, %s1563_s16  ;;  %s928_s16 = scalar_lea.sflag [#allocation4], %s270_s23 }
  0x1a   : > { %300 = vperm.xlu1 %1119, %v282_v6   ;;  %295 = vperm.xlu0 %1118, %v281_v7   ;;  %v394_v26 = vld [vmem:[%s276_s19] sm:$0xf]  ;;  %p1218_p12 = pnand %p1217_p11, %p1365_p5  ;;  %s1222_s19 = scalar_lea.vmem %s1221_s18, 128 }
  0x1b   : > { %v399_v27 = vrot.slane %v394_v26, %v383_v22  ;;  %v403_v28 = vrot.slane %v394_v26, %v402_v23  ;;  %v407_v29 = vrot.slane %v394_v26, %v406_v24  ;;  %v411_v30 = vrot.slane %v394_v26, %v410_v25  ;;  %p1224_p1 = scmp.lt.s32.totalorder %s1222_s19, %s1216_s17 }
  0x1c   : > { %p1219_p13 = pneg %p1218_p12 }
  0x1d   : > { %p1225_p2 = por %p1224_p1, %p1223_p0 }
  0x1e   : > { %324 = vperm.xlu1 %1119, %v306_v8   ;;  %319 = vperm.xlu0 %1118, %v305_v9  }
  0x1f   : > { %p1226_p3 = pnand %p1225_p2, %p1219_p13 }
  0x22   : > { %342 = vperm.xlu1 %1119, %v328_v10   ;;  %337 = vperm.xlu0 %1118, %v327_v11  }
  0x26   : > { %352 = vperm.xlu1 %1119, %v330_v12   ;;  %347 = vperm.xlu0 %1118, %v329_v13  }
  0x2a   : > { %362 = vperm.xlu1 %1119, %v332_v14   ;;  %357 = vperm.xlu0 %1118, %v331_v15  }
  0x2e   : > { %372 = vperm.xlu1 %1119, %v334_v16   ;;  %367 = vperm.xlu0 %1118, %v333_v17  }
  0x32   : > { %378 = vperm.xlu0 %1118, %v375_v18  }
  0x91   : > { %v310_v31 = vpop.permute.xlu1 %309  ;;  %v286_v32 = vpop.permute.xlu0 %285 }
  0x92   : > { %v416_v33 = vmul.f32 %v399_v27, %v286_v32  ;;  %v417_v34 = vmul.f32 %v403_v28, %v286_v32  ;;  %v418_v35 = vmul.f32 %v407_v29, %v286_v32  ;;  %v419_v36 = vmul.f32 %v411_v30, %v286_v32 }
  0x94   : > { %v432_v37 = vadd.f32 %v416_v33, %v310_v31  ;;  %v433_v38 = vadd.f32 %v417_v34, %v310_v31  ;;  %v434_v39 = vadd.f32 %v418_v35, %v310_v31  ;;  %v435_v40 = vadd.f32 %v419_v36, %v310_v31  ;;  %v385_v35 = vld [vmem:[%s1551_s3] sm:$0xff]  ;;  %v386_v36 = vld [vmem:[%s1551_s3 + $0x8] sm:$0xff] }
  0x95   : > { %v315_v41 = vpop.permute.xlu1 %314  ;;  %v291_v42 = vpop.permute.xlu0 %290 }
  0x96   : > { %1120 = vtanh.f32 %v432_v37  ;;  %v420_v43 = vmul.f32 %v399_v27, %v291_v42  ;;  %v421_v44 = vmul.f32 %v403_v28, %v291_v42  ;;  %v422_v45 = vmul.f32 %v407_v29, %v291_v42  ;;  %v387_v37 = vld [vmem:[%s1551_s3 + $0x10] sm:$0xff] }
  0x97   : > { %1122 = vtanh.f32 %v433_v38  ;;  %v423_v46 = vmul.f32 %v411_v30, %v291_v42  ;;  %v388_v38 = vld [vmem:[%s1551_s3 + $0x18] sm:$0xff] }
  0x98   : > { %1124 = vtanh.f32 %v434_v39  ;;  %v436_v47 = vadd.f32 %v420_v43, %v315_v41  ;;  %v437_v48 = vadd.f32 %v421_v44, %v315_v41  ;;  %v438_v49 = vadd.f32 %v422_v45, %v315_v41  ;;  %v389_v39 = vld [vmem:[%s1551_s3 + $0x20] sm:$0xff]  ;;  %v392_v42 = vld [vmem:[%s1551_s3 + $0x38] sm:$0xff] }
  0x99   : > { %1126 = vtanh.f32 %v435_v40  ;;  %v439_v50 = vadd.f32 %v423_v46, %v315_v41  ;;  %v301_v51 = vpop.permute.xlu1 %300  ;;  %v296_v52 = vpop.permute.xlu0 %295  ;;  %v390_v40 = vld [vmem:[%s1551_s3 + $0x28] sm:$0xff]  ;;  %v391_v41 = vld [vmem:[%s1551_s3 + $0x30] sm:$0xff] }
  0x9a   : > { %1128 = vtanh.f32 %v436_v47  ;;  %v428_v53 = vmul.f32 %v399_v27, %v301_v51  ;;  %v429_v54 = vmul.f32 %v403_v28, %v301_v51  ;;  %v430_v55 = vmul.f32 %v407_v29, %v301_v51 }
  0x9b   : > { %1130 = vtanh.f32 %v437_v48  ;;  %v431_v56 = vmul.f32 %v411_v30, %v301_v51  ;;  %v424_v59 = vmul.f32 %v399_v27, %v296_v52  ;;  %v425_v63 = vmul.f32 %v403_v28, %v296_v52 }
  0x9c   : > { %1132 = vtanh.f32 %v438_v49  ;;  %v426_v2 = vmul.f32 %v407_v29, %v296_v52  ;;  %v427_v5 = vmul.f32 %v411_v30, %v296_v52 }
  0x9d   : > { %1134 = vtanh.f32 %v439_v50  ;;  %v325_v57 = vpop.permute.xlu1 %324  ;;  %v320_v58 = vpop.permute.xlu0 %319 }
  0x9e   : > { %v444_v60 = vadd.f32 %v428_v53, %v325_v57  ;;  %v445_v61 = vadd.f32 %v429_v54, %v325_v57  ;;  %v446_v62 = vadd.f32 %v430_v55, %v325_v57  ;;  %v447_v0 = vadd.f32 %v431_v56, %v325_v57 }
  0x9f   : > { %v440_v3 = vadd.f32 %v424_v59, %v320_v58  ;;  %v441_v6 = vadd.f32 %v425_v63, %v320_v58  ;;  %v442_v8 = vadd.f32 %v426_v2, %v320_v58  ;;  %v443_v10 = vadd.f32 %v427_v5, %v320_v58 }
  0xa0   : > { %v1121_v1 = vpop.eup %1120  ;;  %1136 = vtanh.f32 %v444_v60 }
  0xa1   : > { %v1123_v4 = vpop.eup %1122  ;;  %1138 = vtanh.f32 %v445_v61  ;;  %v338_v43 = vpop.permute.xlu0 %337 }
  0xa2   : > { %v1125_v7 = vpop.eup %1124  ;;  %1140 = vtanh.f32 %v446_v62  ;;  %v343_v51 = vpop.permute.xlu1 %342 }
  0xa3   : > { %v1127_v9 = vpop.eup %1126  ;;  %1142 = vtanh.f32 %v447_v0 }
  0xa4   : > { %v1129_v11 = vpop.eup %1128  ;;  %1144 = vtanh.f32 %v440_v3 }
  0xa5   : > { %v1131_v12 = vpop.eup %1130  ;;  %1146 = vtanh.f32 %v441_v6  ;;  %v1030_v13 = vpack.c.bf16 %v1129_v11, %v1121_v1  ;;  %v348_v59 = vpop.permute.xlu0 %347 }
  0xa6   : > { %v1133_v14 = vpop.eup %1132  ;;  %1148 = vtanh.f32 %v442_v8  ;;  %v1028_v15 = vpack.c.bf16 %v1131_v12, %v1123_v4  ;;  %v353_v4 = vpop.permute.xlu1 %352 }
  0xa7   : > { %v1135_v16 = vpop.eup %1134  ;;  %1150 = vtanh.f32 %v443_v10  ;;  %v1038_v17 = vpack.c.bf16 %v1133_v14, %v1125_v7 }
  0xa8   : > { %1029 = vmatprep.subr.bf16.mxu0 %v1028_v15  ;;  %v1036_v18 = vpack.c.bf16 %v1135_v16, %v1127_v9 }
  0xa9   : > { %1031 = vmatpush1.bf16.msra.mxu0 %v1030_v13 }
  0xaa   : > { %v1137_v23 = vpop.eup %1136  ;;  %1037 = vmatprep.subr.bf16.mxu1 %v1036_v18 }
  0xab   : > { %v1139_v24 = vpop.eup %1138  ;;  %1039 = vmatpush1.bf16.msra.mxu1 %v1038_v17  ;;  %v358_v17 = vpop.permute.xlu0 %357 }
  0xac   : > { %v1141_v25 = vpop.eup %1140 }
  0xad   : > { %v1143_v26 = vpop.eup %1142 }
  0xae   : > { %v1145_v27 = vpop.eup %1144 }
  0xaf   : > { %v1147_v28 = vpop.eup %1146  ;;  %v1034_v29 = vpack.c.bf16 %v1137_v23, %v1145_v27 }
  0xb0   : > { %v1149_v30 = vpop.eup %1148  ;;  %v1032_v31 = vpack.c.bf16 %v1139_v24, %v1147_v28 }
  0xb1   : > { %v1151_v32 = vpop.eup %1150  ;;  %v1042_v33 = vpack.c.bf16 %v1141_v25, %v1149_v30 }
  0xb2   : > { %1033 = vmatprep.subr.bf16.mxu0 %v1032_v31  ;;  %v1040_v34 = vpack.c.bf16 %v1143_v26, %v1151_v32 }
  0xb3   : > { %1035 = vmatpush1.bf16.msra.mxu0 %v1034_v29 }
  0xb4   : > { %1041 = vmatprep.subr.bf16.mxu1 %v1040_v34 }
  0xb5   : > { %1043 = vmatpush1.bf16.msra.mxu1 %v1042_v33 }
  0xb6   : > { %1004 = vmatmul.mubr.msk.f32.vlgmr.msra.gmra.mrb[0].mxu0 %vm464_vm0, %v385_v35 }
  0xb7   : > { %559 = vmatprep.mubr.f32.mxu0 %v1281_v19 }
  0xb8   : > { %1012 = vmatmul.mubr.msk.f32.vlgmr.msra.gmra.mrb[0].mxu1 %vm464_vm0, %v385_v35 }
  0xb9   : > { %672 = vmatprep.mubr.f32.mxu1 %v1281_v19 }
  0xba   : > { %1005 = vmatmul.mubr.msk.f32.gmra.mrb[2].mxu0 %vm464_vm0, %v386_v36 }
  0xbb   : > { %565 = vmatprep.mubr.f32.mxu0 %v1281_v19 }
  0xbc   : > { %1013 = vmatmul.mubr.msk.f32.gmra.mrb[2].mxu1 %vm464_vm0, %v386_v36  ;;  %v363_v36 = vpop.permute.xlu1 %362 }
  0xbd   : > { %678 = vmatprep.mubr.f32.mxu1 %v1281_v19 }
  0xbe   : > { %1006 = vmatmul.mubr.msk.f32.gmra.mrb[4].mxu0 %vm464_vm0, %v387_v37 }
  0xbf   : > { %571 = vmatprep.mubr.f32.mxu0 %v1281_v19 }
  0xc0   : > { %1014 = vmatmul.mubr.msk.f32.gmra.mrb[4].mxu1 %vm464_vm0, %v387_v37 }
  0xc1   : > { %684 = vmatprep.mubr.f32.mxu1 %v1281_v19 }
  0xc2   : > { %1007 = vmatmul.mubr.msk.f32.gmra.mrb[6].mxu0 %vm464_vm0, %v388_v38 }
  0xc3   : > { %577 = vmatprep.mubr.f32.mxu0 %v1281_v19 }
  0xc4   : > { %1015 = vmatmul.mubr.msk.f32.gmra.mrb[6].mxu1 %vm464_vm0, %v388_v38 }
  0xc5   : > { %690 = vmatprep.mubr.f32.mxu1 %v1281_v19 }
  0xc6   : > { %1008 = vmatmul.mubr.msk.f32.gmra.mrb[8].mxu0 %vm464_vm0, %v389_v39 }
  0xc7   : > { %583 = vmatprep.mubr.f32.mxu0 %v1281_v19 }
  0xc8   : > { %1016 = vmatmul.mubr.msk.f32.gmra.mrb[8].mxu1 %vm464_vm0, %v389_v39 }
  0xc9   : > { %696 = vmatprep.mubr.f32.mxu1 %v1281_v19 }
  0xca   : > { %1009 = vmatmul.mubr.msk.f32.gmra.mrb[10].mxu0 %vm464_vm0, %v390_v40 }
  0xcb   : > { %589 = vmatprep.mubr.f32.mxu0 %v1281_v19 }
  0xcc   : > { %1017 = vmatmul.mubr.msk.f32.gmra.mrb[10].mxu1 %vm464_vm0, %v390_v40 }
  0xcd   : > { %702 = vmatprep.mubr.f32.mxu1 %v1281_v19 }
  0xce   : > { %1010 = vmatmul.mubr.msk.f32.gmra.mrb[12].mxu0 %vm464_vm0, %v391_v41 }
  0xcf   : > { %595 = vmatprep.mubr.f32.mxu0 %v1281_v19 }
  0xd0   : > { %1018 = vmatmul.mubr.msk.f32.gmra.mrb[12].mxu1 %vm464_vm0, %v391_v41 }
  0xd1   : > { %708 = vmatprep.mubr.f32.mxu1 %v1281_v19 }
  0xd2   : > { %1011 = vmatmul.mubr.msk.f32.gmra.mrb[14].mxu0 %vm464_vm0, %v392_v42 }
  0xd3   : > { %815 = vmatprep.mubr.f32.mxu0 %v1281_v19 }
  0xd4   : > { %1019 = vmatmul.mubr.msk.f32.gmra.mrb[14].mxu1 %vm464_vm0, %v392_v42 }
  0xd5   : > { %886 = vmatprep.mubr.f32.mxu1 %v1281_v19 }
 0x189   : > { %v555_v44 = vpop.f32.mrb[0].mxu0 }
 0x18a   : > { %v556_v45 = vadd.f32 %v555_v44, %v338_v43  ;;  %v557_v46 = vpop.f32.mrb[1].mxu0 }
 0x18b   : > { %v668_v47 = vpop.f32.mrb[0].mxu1  ;;  %v558_v48 = vadd.f32 %v557_v46, %v338_v43 }
 0x18c   : > { %1152 = vtanh.f32 %v556_v45  ;;  %v669_v49 = vadd.f32 %v668_v47, %v338_v43  ;;  %v670_v50 = vpop.f32.mrb[1].mxu1 }
 0x18d   : > { %1154 = vtanh.f32 %v558_v48  ;;  %v671_v52 = vadd.f32 %v670_v50, %v338_v43  ;;  %v561_v53 = vpop.f32.mrb[2].mxu0 }
 0x18e   : > { %1156 = vtanh.f32 %v669_v49  ;;  %v562_v54 = vadd.f32 %v561_v53, %v343_v51  ;;  %v563_v55 = vpop.f32.mrb[3].mxu0 }
 0x18f   : > { %1158 = vtanh.f32 %v671_v52  ;;  %v674_v56 = vpop.f32.mrb[2].mxu1  ;;  %v564_v57 = vadd.f32 %v563_v55, %v343_v51 }
 0x190   : > { %1160 = vtanh.f32 %v562_v54  ;;  %v675_v19 = vadd.f32 %v674_v56, %v343_v51  ;;  %v676_v58 = vpop.f32.mrb[3].mxu1 }
 0x191   : > { %1162 = vtanh.f32 %v564_v57  ;;  %v677_v60 = vadd.f32 %v676_v58, %v343_v51  ;;  %v567_v61 = vpop.f32.mrb[4].mxu0  ;;  %v368_v51 = vpop.permute.xlu0 %367 }
 0x192   : > { %1164 = vtanh.f32 %v675_v19  ;;  %v568_v62 = vadd.f32 %v567_v61, %v348_v59  ;;  %v569_v63 = vpop.f32.mrb[5].mxu0 }
 0x193   : > { %1166 = vtanh.f32 %v677_v60  ;;  %v680_v0 = vpop.f32.mrb[4].mxu1  ;;  %v570_v1 = vadd.f32 %v569_v63, %v348_v59 }
 0x194   : > { %1168 = vtanh.f32 %v568_v62  ;;  %v681_v2 = vadd.f32 %v680_v0, %v348_v59  ;;  %v682_v3 = vpop.f32.mrb[5].mxu1 }
 0x195   : > { %1170 = vtanh.f32 %v570_v1  ;;  %v683_v5 = vadd.f32 %v682_v3, %v348_v59  ;;  %v573_v6 = vpop.f32.mrb[6].mxu0  ;;  %v373_v1 = vpop.permute.xlu1 %372 }
 0x196   : > { %v1153_v7 = vpop.eup %1152  ;;  %1172 = vtanh.f32 %v681_v2  ;;  %v574_v8 = vadd.f32 %v573_v6, %v353_v4  ;;  %v575_v9 = vpop.f32.mrb[7].mxu0 }
 0x197   : > { %v1155_v10 = vpop.eup %1154  ;;  %1174 = vtanh.f32 %v683_v5  ;;  %v686_v11 = vpop.f32.mrb[6].mxu1  ;;  %v576_v12 = vadd.f32 %v575_v9, %v353_v4 }
 0x198   : > { %v1157_v13 = vpop.eup %1156  ;;  %1176 = vtanh.f32 %v574_v8  ;;  %v687_v14 = vadd.f32 %v686_v11, %v353_v4  ;;  %v688_v15 = vpop.f32.mrb[7].mxu1 }
 0x199   : > { %v1159_v16 = vpop.eup %1158  ;;  %1178 = vtanh.f32 %v576_v12  ;;  %v689_v18 = vadd.f32 %v688_v15, %v353_v4  ;;  %v579_v23 = vpop.f32.mrb[8].mxu0 }
 0x19a   : > { %v1161_v24 = vpop.eup %1160  ;;  %1180 = vtanh.f32 %v687_v14  ;;  %v580_v25 = vadd.f32 %v579_v23, %v358_v17  ;;  %v581_v26 = vpop.f32.mrb[9].mxu0 }
 0x19b   : > { %v1163_v27 = vpop.eup %1162  ;;  %1182 = vtanh.f32 %v689_v18  ;;  %v692_v28 = vpop.f32.mrb[8].mxu1  ;;  %v582_v29 = vadd.f32 %v581_v26, %v358_v17  ;;  %v1046_v30 = vpack.c.bf16 %v1161_v24, %v1153_v7 }
 0x19c   : > { %v1165_v31 = vpop.eup %1164  ;;  %1184 = vtanh.f32 %v580_v25  ;;  %v693_v32 = vadd.f32 %v692_v28, %v358_v17  ;;  %v694_v33 = vpop.f32.mrb[9].mxu1  ;;  %v1044_v34 = vpack.c.bf16 %v1163_v27, %v1155_v10 }
 0x19d   : > { %v1167_v35 = vpop.eup %1166  ;;  %1186 = vtanh.f32 %v582_v29  ;;  %v695_v37 = vadd.f32 %v694_v33, %v358_v17  ;;  %v585_v38 = vpop.f32.mrb[10].mxu0  ;;  %v1062_v39 = vpack.c.bf16 %v1165_v31, %v1157_v13 }
 0x19e   : > { %v1169_v40 = vpop.eup %1168  ;;  %1188 = vtanh.f32 %v693_v32  ;;  %v586_v41 = vadd.f32 %v585_v38, %v363_v36  ;;  %v587_v42 = vpop.f32.mrb[11].mxu0  ;;  %1045 = vmatprep.subr.bf16.mxu0 %v1044_v34  ;;  %v1060_v43 = vpack.c.bf16 %v1167_v35, %v1159_v16 }
 0x19f   : > { %v1171_v44 = vpop.eup %1170  ;;  %1190 = vtanh.f32 %v695_v37  ;;  %v698_v45 = vpop.f32.mrb[10].mxu1  ;;  %v588_v46 = vadd.f32 %v587_v42, %v363_v36  ;;  %1047 = vmatpush1.bf16.msra.mxu0 %v1046_v30  ;;  %v1282_v42 = vmov 1966171168  }
 0x1a0   : > { %v1173_v47 = vpop.eup %1172  ;;  %1192 = vtanh.f32 %v586_v41  ;;  %v699_v48 = vadd.f32 %v698_v45, %v363_v36  ;;  %v700_v49 = vpop.f32.mrb[11].mxu1  ;;  %1061 = vmatprep.subr.bf16.mxu1 %v1060_v43  ;;  %v393_v41 = vld [vmem:[%s1553_s5] sm:$0x1]  ;;  %v900_v43 = vunpack.c.l.s4 %v1282_v42 }
 0x1a1   : > { %v1175_v50 = vpop.eup %1174  ;;  %1194 = vtanh.f32 %v588_v46  ;;  %v701_v52 = vadd.f32 %v700_v49, %v363_v36  ;;  %1063 = vmatpush1.bf16.msra.mxu1 %v1062_v39  ;;  %v591_v53 = vpop.f32.mrb[12].mxu0 }
 0x1a2   : > { %v1177_v54 = vpop.eup %1176  ;;  %1196 = vtanh.f32 %v699_v48  ;;  %v592_v55 = vadd.f32 %v591_v53, %v368_v51  ;;  %v593_v56 = vpop.f32.mrb[13].mxu0  ;;  %v901_v45 = vunpack.c.0.s8 %v900_v43 }
 0x1a3   : > { %v1179_v57 = vpop.eup %1178  ;;  %1198 = vtanh.f32 %v701_v52  ;;  %v704_v19 = vpop.f32.mrb[12].mxu1  ;;  %v594_v58 = vadd.f32 %v593_v56, %v368_v51  ;;  %v1050_v59 = vpack.c.bf16 %v1177_v54, %v1169_v40 }
 0x1a4   : > { %v1181_v60 = vpop.eup %1180  ;;  %1200 = vtanh.f32 %v592_v55  ;;  %v705_v61 = vadd.f32 %v704_v19, %v368_v51  ;;  %v706_v62 = vpop.f32.mrb[13].mxu1  ;;  %v1048_v63 = vpack.c.bf16 %v1179_v57, %v1171_v44  ;;  %v904_v52 = vsub.s32 %v901_v45, %v1427_v21 }
 0x1a5   : > { %v1183_v0 = vpop.eup %1182  ;;  %1202 = vtanh.f32 %v594_v58  ;;  %v707_v2 = vadd.f32 %v706_v62, %v368_v51  ;;  %v597_v3 = vpop.f32.mrb[14].mxu0  ;;  %v1066_v4 = vpack.c.bf16 %v1181_v60, %v1173_v47 }
 0x1a6   : > { %v1185_v5 = vpop.eup %1184  ;;  %1204 = vtanh.f32 %v705_v61  ;;  %v598_v6 = vadd.f32 %v597_v3, %v373_v1  ;;  %v599_v7 = vpop.f32.mrb[15].mxu0  ;;  %1049 = vmatprep.subr.bf16.mxu0 %v1048_v63  ;;  %v1064_v8 = vpack.c.bf16 %v1183_v0, %v1175_v50 }
 0x1a7   : > { %v1187_v9 = vpop.eup %1186  ;;  %1206 = vtanh.f32 %v707_v2  ;;  %v710_v10 = vpop.f32.mrb[14].mxu1  ;;  %v600_v11 = vadd.f32 %v599_v7, %v373_v1  ;;  %1051 = vmatpush1.bf16.msra.mxu0 %v1050_v59 }
 0x1a8   : > { %v1189_v12 = vpop.eup %1188  ;;  %1208 = vtanh.f32 %v598_v6  ;;  %v711_v13 = vadd.f32 %v710_v10, %v373_v1  ;;  %v712_v14 = vpop.f32.mrb[15].mxu1  ;;  %1065 = vmatprep.subr.bf16.mxu1 %v1064_v8 }
 0x1a9   : > { %v1191_v15 = vpop.eup %1190  ;;  %1210 = vtanh.f32 %v600_v11  ;;  %v713_v16 = vadd.f32 %v712_v14, %v373_v1  ;;  %1067 = vmatpush1.bf16.msra.mxu1 %v1066_v4  ;;  %v379_v44 = vpop.permute.xlu0 %378 }
 0x1aa   : > { %v1193_v17 = vpop.eup %1192  ;;  %1212 = vtanh.f32 %v711_v13  ;;  %v384_v46 = vrot.slane %v379_v44, %v383_v22 }
 0x1ab   : > { %v1195_v18 = vpop.eup %1194  ;;  %1214 = vtanh.f32 %v713_v16  ;;  %v1054_v23 = vpack.c.bf16 %v1193_v17, %v1185_v5 }
 0x1ac   : > { %v1197_v24 = vpop.eup %1196  ;;  %v1052_v25 = vpack.c.bf16 %v1195_v18, %v1187_v9 }
 0x1ad   : > { %v1199_v26 = vpop.eup %1198  ;;  %v1070_v27 = vpack.c.bf16 %v1197_v24, %v1189_v12 }
 0x1ae   : > { %v1201_v28 = vpop.eup %1200  ;;  %1053 = vmatprep.subr.bf16.mxu0 %v1052_v25  ;;  %v1068_v29 = vpack.c.bf16 %v1199_v26, %v1191_v15 }
 0x1af   : > { %v1203_v30 = vpop.eup %1202  ;;  %1055 = vmatpush1.bf16.msra.mxu0 %v1054_v23 }
 0x1b0   : > { %v1205_v31 = vpop.eup %1204  ;;  %1069 = vmatprep.subr.bf16.mxu1 %v1068_v29 }
 0x1b1   : > { %v1207_v32 = vpop.eup %1206  ;;  %1071 = vmatpush1.bf16.msra.mxu1 %v1070_v27 }
 0x1b2   : > { %v1209_v33 = vpop.eup %1208 }
 0x1b3   : > { %v1211_v34 = vpop.eup %1210  ;;  %v1058_v35 = vpack.c.bf16 %v1209_v33, %v1201_v28 }
 0x1b4   : > { %v1213_v36 = vpop.eup %1212  ;;  %v1056_v37 = vpack.c.bf16 %v1211_v34, %v1203_v30 }
 0x1b5   : > { %v1215_v38 = vpop.eup %1214  ;;  %v1074_v39 = vpack.c.bf16 %v1213_v36, %v1205_v31 }
 0x1b6   : > { %1057 = vmatprep.subr.bf16.mxu0 %v1056_v37  ;;  %v1072_v40 = vpack.c.bf16 %v1215_v38, %v1207_v32 }
 0x1b7   : > { %1059 = vmatpush1.bf16.msra.mxu0 %v1058_v35 }
 0x1b8   : > { %1073 = vmatprep.subr.bf16.mxu1 %v1072_v40 }
 0x1b9   : > { %1075 = vmatpush1.bf16.msra.mxu1 %v1074_v39 }
 0x1ba   : > { %1020 = vmatmul.mubr.msk.f32.vlgmr.msra.gmra.mrb[16].mxu0 %vm747_vm1, %v393_v41 }
 0x1bc   : > { %1021 = vmatmul.mubr.msk.f32.vlgmr.msra.gmra.mrb[16].mxu1 %vm747_vm1, %v393_v41 }
 0x28d   : > { %v817_v47 = vpop.f32.mrb[16].mxu0 }
 0x28e   : > { %v818_v48 = vadd.f32 %v817_v47, %v384_v46  ;;  %v819_v49 = vpop.f32.mrb[17].mxu0 }
 0x28f   : > { %v888_v50 = vpop.f32.mrb[16].mxu1  ;;  %v820_v51 = vadd.f32 %v819_v49, %v384_v46 }
 0x290   : > { %v889_v53 = vadd.f32 %v888_v50, %v384_v46  ;;  %v890_v54 = vpop.f32.mrb[17].mxu1 }
 0x291   : > { %v897_v55 = vcombine.low %v818_v48, %v820_v51  ;;  %v891_v56 = vadd.f32 %v890_v54, %v384_v46 }
 0x293   : > { %v905_v57 = vrot.slane %v897_v55, %v904_v52  ;;  %v898_v19 = vcombine.low %v889_v53, %v891_v56 }
 0x295   : > { %v912_v58 = vrot.slane %v898_v19, %v904_v52 }
 0x297   : > { %v913_v22 = vcombine.low %v905_v57, %v912_v58 }
 0x299   : > { %v920_v59 = vrot.slane %v913_v22, %v904_v52 }
 0x29b   : > { %926 = vst.msk [vmem:[%s272_s30] sm:$0xf] %vm924_vm2, %v920_v59 }
 0x29c   : > { %1229 = shalt.err (!%p1226_p3)
}
 0x29d   : > { %s1230_s20 = scalar_lea.hbm %s1506_s15, 64  ;;  %s1234_s23 = scalar_lea.hbm %s1555_s7, 128 }
 0x29e   : > { %p1231_p4 = scmp.ne.s32.totalorder %s1506_s15, %s1230_s20  ;;  %p1235_p9 = scmp.lt.u32.totalorder %s1506_s15, %s1555_s7 }
 0x29f   : > { %p1236_p10 = scmp.lt.u32.totalorder %s1234_s23, %s1230_s20  ;;  %p1238_p12 = scmp.lt.u32.totalorder %s1230_s20, %s1506_s15 }
 0x2a0   : > { %p1232_p7 = pnand %p1231_p4, %p1365_p5 }
 0x2a1   : > { %p1237_p11 = por %p1236_p10, %p1235_p9 }
 0x2a2   : > { %p1233_p8 = pneg %p1232_p7 }
 0x2a3   : > { %p1239_p13 = por %p1238_p12, %p1237_p11 }
 0x2a5   : > { %p1240_p0 = pnand %p1239_p13, %p1233_p8 }
 0x2a7   : > { %1243 = shalt.err (!%p1240_p0)
}
 0x2a8   : > { %1076 = dma.vmem_to_hbm [thread:$0]  (%p1365_p5), %s1508_s9, 64, %s1506_s15, %s928_s16  }
 0x2a9 PF: > { %p1082_p1 = scmp.ge.s32.totalorder %s1278_s29, 2  ;;  %s954_s30 = sand.u32 1, %s1266_s26  }
 0x2aa   : > { %s955_s10 = scalar_lea.sflag [#allocation4], %s954_s30 }
 0x2ab   : > { %p1079_p2 = pnand %p1082_p1, %p1369_p6 }
 0x2ad   : > { %1261 = dma.done.wait (!%p1079_p2), %s955_s10, 64  }
 0x2ae   : > { %1263 = vsyncadd (!%p1079_p2), %s955_s10, 4294967232  ;;  %p19_p3 = scmp.ge.s32.totalorder %s1352_s8, 4   ;;  %s1558_s26 = smov %s1270_s27 }
 0x2af   : > { %s1559_s27 = smov %s1274_s28  ;;  %s1560_s28 = smov %s1363_s11 }
 0x2b0   : > { %s1561_s29 = smov %s1352_s8  ;;  %21 = sbr.rel (!%p19_p3) target bundleno = 6 (0x6), region = 83 }
 0x2b7   :  { %960 = vsyncpa [#allocation4], 1 }
 0x2b8   :  { %962 = vsyncpa [#allocation4 + $0x1], 1 }

</bundles_post_ra>
